<compile_context>
chip_gen: v5e
topology: v5e:2x2
jax: 0.10.0
libtpu: 0.0.40
codegen_flags: <defaults>
</compile_context>

<pallas_src>
import functools

import jax
import jax.numpy as jnp
from jax.experimental import pallas as pl
from jax.experimental.pallas import tpu as pltpu


# ------------------------------- Pallas kernel ------------------------------ #

def _tcn_fused_kernel(*refs, layer_cfgs, n_seq, L, matmul_dtype):
    """TCN forward for one block of `n_seq` whole sequences.

    refs = (x_ref, *per_layer_weight_refs, wfc_ref, bfc_ref, o_ref)
      x_ref : (n_seq*L, C_in)  activations, channels on the lane axis
      o_ref : (n_seq, 1, n_out) logits for the sequences of this block
    layer_cfgs: tuple of (dilation, has_downsample) per TemporalBlock.
    """
    x_ref = refs[0]
    o_ref = refs[-1]
    wfc_ref, bfc_ref = refs[-3], refs[-2]
    w_refs = refs[1:-3]

    rows = n_seq * L
    # Within-sequence time index, built in-kernel (no extra input DMA / VMEM buffer).
    t_idx = jax.lax.broadcasted_iota(jnp.int32, (rows, 1), 0)
    t_idx = (t_idx & (L - 1)) if (L & (L - 1)) == 0 else (t_idx % L)

    def mm(a, w_ref):
        # MXU matmul; operands optionally cast to bf16, accumulation always f32.
        return jnp.dot(a.astype(matmul_dtype), w_ref[...].astype(matmul_dtype),
                       preferred_element_type=jnp.float32)

    x = x_ref[...]                                          # (rows, C_in), float32

    i = 0
    for dilation, has_ds in layer_cfgs:
        w1a, w1b, b1 = w_refs[i], w_refs[i + 1], w_refs[i + 2]
        w2a, w2b, b2 = w_refs[i + 3], w_refs[i + 4], w_refs[i + 5]
        i += 6
        if has_ds:
            wd, bd = w_refs[i], w_refs[i + 1]
            i += 2

        # Causal-shift mask for this dilation, hoisted: built once, used by both convs.
        keep = t_idx >= dilation                            # (rows, 1) bool

        def causal_shift(a, d=dilation, keep=keep):
            # a[r] -> a[r - d] within each length-L sequence; zeros where t < d.
            if d >= L:
                return jnp.zeros_like(a)
            rolled = pltpu.roll(a, shift=d, axis=0)         # XLU rotate, no VMEM copy
            # Rows whose shifted source crossed a sequence boundary (t < d) are zeroed,
            # which also kills cross-sequence contamination from the circular roll.
            return jnp.where(keep, rolled, 0.0)

        # conv1 (k=2, dilation=d) + chomp + ReLU   (dropout == identity at inference)
        h1 = jnp.maximum(mm(causal_shift(x), w1a) + mm(x, w1b) + b1[...], 0.0)
        # conv2 (k=2, dilation=d) + chomp + ReLU
        h2 = jnp.maximum(mm(causal_shift(h1), w2a) + mm(h1, w2b) + b2[...], 0.0)
        # residual branch (1x1 conv only when the channel count changes), final ReLU
        if has_ds:
            res = mm(x, wd) + bd[...]
        else:
            res = x
        x = jnp.maximum(h2 + res, 0.0)

    # Head: AdaptiveMaxPool1d(1) over time (per sequence) + Flatten + Linear.
    pooled = jnp.max(x.reshape(n_seq, L, x.shape[-1]), axis=1)      # (n_seq, C_last)
    logits = mm(pooled, wfc_ref) + bfc_ref[...]                     # (n_seq, n_out)
    o_ref[...] = logits.reshape(n_seq, 1, logits.shape[-1])


# ------------------------------- JAX wrapper -------------------------------- #

def _resident(shape):
    """Full-array block with a constant index_map: stays resident across grid steps."""
    return pl.BlockSpec(shape, lambda b: (0,) * len(shape))


def _choose_seqs_per_block(B, L, c_max, act_bytes, vmem_budget_bytes):
    # Rough per-sequence live footprint: ~6 f32 activation tensors of width <= c_max plus
    # 2 matmul-operand copies in `act_bytes`, x2 for the double-buffered input block.
    per_seq = L * c_max * (6 * 4 + 2 * act_bytes) * 2
    n = max(1, vmem_budget_bytes // per_seq)
    if B >= 2:
        n = min(n, B // 2)     # keep >= 2 grid blocks so both v7x TensorCores get work
    n = max(1, n)
    while B % n:               # blocks must hold whole sequences
        n -= 1
    return n


def temporal_conv_net(x_ncl, params, wfc, bfc, *, matmul_dtype=jnp.float32,
                      seqs_per_block=None):
    """Full TCN forward.  x_ncl: (B, C_in, L) as in PyTorch; returns (B, 2) logits."""
    B, C_in, L = x_ncl.shape
    # (B, C, L) -> (B, L, C) -> (B*L, C): channels on lanes, batch*time on sublanes.
    x2d = jnp.transpose(x_ncl, (0, 2, 1)).reshape(B * L, C_in)

    c_max = max([C_in] + [p["b2"].shape[-1] for p in params])
    act_bytes = jnp.dtype(matmul_dtype).itemsize
    if seqs_per_block is None:
        # Re-derive per generation if changed: v7x has only 64 MiB physical VMEM.
        seqs_per_block = _choose_seqs_per_block(B, L, c_max, act_bytes,
                                                vmem_budget_bytes=8 * 1024 * 1024)
    assert B % seqs_per_block == 0
    rows = seqs_per_block * L
    assert rows % 8 == 0, "row tile must be a multiple of 8 (prefer 16 for bf16 operands)"

    layer_cfgs = []
    args = [x2d]
    in_specs = [pl.BlockSpec((rows, C_in), lambda b: (b, 0))]
    for i, p in enumerate(params):
        has_ds = "wd" in p
        layer_cfgs.append((2 ** i, has_ds))
        names = ["w1_0", "w1_1", "b1", "w2_0", "w2_1", "b2"]
        if has_ds:
            names += ["wd", "bd"]
        for name in names:
            args.append(p[name])
            in_specs.append(_resident(p[name].shape))
    args += [wfc, bfc]
    in_specs += [_resident(wfc.shape), _resident(bfc.shape)]

    nout = wfc.shape[1]
    kernel = functools.partial(_tcn_fused_kernel, layer_cfgs=tuple(layer_cfgs),
                               n_seq=seqs_per_block, L=L, matmul_dtype=matmul_dtype)

    out = pl.pallas_call(
        kernel,
        out_shape=jax.ShapeDtypeStruct((B, 1, nout), jnp.float32),
        grid=(B // seqs_per_block,),
        in_specs=in_specs,
        out_specs=pl.BlockSpec((seqs_per_block, 1, nout), lambda b: (b, 0, 0)),
        compiler_params=pltpu.CompilerParams(
            dimension_semantics=("parallel",),       # shard batch blocks across TCs (v7x)
            vmem_limit_bytes=32 * 1024 * 1024,       # explicit, safe on all generations
        ),
    )(*args)
    return out.reshape(B, nout)


# --------------------------- parameter construction ------------------------- #

def init_params(key, num_inputs, num_channels, kernel_size=2):
    assert kernel_size == 2, "kernel is specialized to kernel_size=2 (TCN default)"
    params = []
    cin = num_inputs
    for cout in num_channels:
        key, k1, k2, k3, k4, k5, k6 = jax.random.split(key, 7)
        # PyTorch Conv1d weight layout: (Cout, Cin, K); init normal(0, 0.01).
        w1 = 0.01 * jax.random.normal(k1, (cout, cin, kernel_size), jnp.float32)
        w2 = 0.01 * jax.random.normal(k2, (cout, cout, kernel_size), jnp.float32)
        b1 = 0.01 * jax.random.normal(k3, (cout,), jnp.float32)
        b2 = 0.01 * jax.random.normal(k4, (cout,), jnp.float32)
        p = dict(
            # Tap 0 multiplies the time-shifted input x[t-d]; tap 1 multiplies x[t].
            w1_0=w1[:, :, 0].T, w1_1=w1[:, :, 1].T, b1=b1[None, :],
            w2_0=w2[:, :, 0].T, w2_1=w2[:, :, 1].T, b2=b2[None, :],
        )
        if cin != cout:  # downsample 1x1 conv only when it exists in the PyTorch module
            wd = 0.01 * jax.random.normal(k5, (cout, cin, 1), jnp.float32)
            bd = 0.01 * jax.random.normal(k6, (cout,), jnp.float32)
            p["wd"] = wd[:, :, 0].T
            p["bd"] = bd[None, :]
        params.append(p)
        cin = cout
    key, kf, kb = jax.random.split(key, 3)
    wfc = 0.01 * jax.random.normal(kf, (2, num_channels[-1]), jnp.float32)
    bfc = 0.01 * jax.random.normal(kb, (2,), jnp.float32)
    return params, wfc.T, bfc[None, :]


# ----------------------------- pure-JAX reference ---------------------------- #

def reference(x_ncl, params, wfc, bfc):
    x = jnp.transpose(x_ncl, (0, 2, 1))      # (B, L, C)
    for i, p in enumerate(params):
        d = 2 ** i

        def shift(a, d=d):
            return jnp.pad(a, ((0, 0), (d, 0), (0, 0)))[:, :a.shape[1], :]

        h1 = jnp.maximum(shift(x) @ p["w1_0"] + x @ p["w1_1"] + p["b1"], 0.0)
        h2 = jnp.maximum(shift(h1) @ p["w2_0"] + h1 @ p["w2_1"] + p["b2"], 0.0)
        res = x @ p["wd"] + p["bd"] if "wd" in p else x
        x = jnp.maximum(h2 + res, 0.0)
    pooled = jnp.max(x, axis=1)              # AdaptiveMaxPool1d(1) + Flatten
    return pooled @ wfc + bfc


# ------------------------------------ main ----------------------------------- #

if __name__ == "__main__":
    B, C_IN, L = 2, 4, 16
    NUM_CHANNELS = [8, 16]

    key = jax.random.PRNGKey(0)
    key, kx = jax.random.split(key)
    x = jax.random.normal(kx, (B, C_IN, L), jnp.float32)   # PyTorch NCL input

    params, wfc, bfc = init_params(key, C_IN, NUM_CHANNELS, kernel_size=2)
    ref = reference(x, params, wfc, bfc)

    # f32 MXU path (bit-for-bit comparable to the f32 reference).
    out = jax.block_until_ready(temporal_conv_net(x, params, wfc, bfc))
    assert out.shape == (B, 2), out.shape
    assert jnp.allclose(out, ref, atol=1e-5, rtol=1e-5), (out, ref)

    # bf16-operand MXU path (fast path on v6e/v7x; f32 accumulation, looser tolerance).
    out_bf16 = jax.block_until_ready(
        temporal_conv_net(x, params, wfc, bfc, matmul_dtype=jnp.bfloat16))
    assert out_bf16.shape == (B, 2), out_bf16.shape
    assert jnp.allclose(out_bf16, ref, atol=5e-3, rtol=5e-2), (out_bf16, ref)

    print("KERNEL_OK")
</pallas_src>

<mosaic_0001>
module attributes {stable_mosaic.version = 11 : i64} {
  func.func @_tcn_fused_kernel(%arg0: i32, %arg1: memref<16x4xf32, #tpu.memory_space<vmem>>, %arg2: memref<4x8xf32, #tpu.memory_space<vmem>>, %arg3: memref<4x8xf32, #tpu.memory_space<vmem>>, %arg4: memref<1x8xf32, #tpu.memory_space<vmem>>, %arg5: memref<8x8xf32, #tpu.memory_space<vmem>>, %arg6: memref<8x8xf32, #tpu.memory_space<vmem>>, %arg7: memref<1x8xf32, #tpu.memory_space<vmem>>, %arg8: memref<4x8xf32, #tpu.memory_space<vmem>>, %arg9: memref<1x8xf32, #tpu.memory_space<vmem>>, %arg10: memref<8x16xf32, #tpu.memory_space<vmem>>, %arg11: memref<8x16xf32, #tpu.memory_space<vmem>>, %arg12: memref<1x16xf32, #tpu.memory_space<vmem>>, %arg13: memref<16x16xf32, #tpu.memory_space<vmem>>, %arg14: memref<16x16xf32, #tpu.memory_space<vmem>>, %arg15: memref<1x16xf32, #tpu.memory_space<vmem>>, %arg16: memref<8x16xf32, #tpu.memory_space<vmem>>, %arg17: memref<1x16xf32, #tpu.memory_space<vmem>>, %arg18: memref<16x2xf32, #tpu.memory_space<vmem>>, %arg19: memref<1x2xf32, #tpu.memory_space<vmem>>, %arg20: memref<1x1x2xf32, #tpu.memory_space<vmem>>) attributes {dimension_semantics = [#tpu.dimension_semantics<parallel>], iteration_bounds = array<i64: 2>, scalar_prefetch = 0 : i64, scratch_operands = 0 : i64, tpu.core_type = #tpu.core_type<tc>, window_params = [{transform_indices = @transform_0, window_bounds = array<i64: 16, 4>}, {pipeline_mode = #tpu.pipeline_mode<synchronous>, transform_indices = @transform_1, window_bounds = array<i64: 4, 8>}, {pipeline_mode = #tpu.pipeline_mode<synchronous>, transform_indices = @transform_2, window_bounds = array<i64: 4, 8>}, {pipeline_mode = #tpu.pipeline_mode<synchronous>, transform_indices = @transform_3, window_bounds = array<i64: 1, 8>}, {pipeline_mode = #tpu.pipeline_mode<synchronous>, transform_indices = @transform_4, window_bounds = array<i64: 8, 8>}, {pipeline_mode = #tpu.pipeline_mode<synchronous>, transform_indices = @transform_5, window_bounds = array<i64: 8, 8>}, {pipeline_mode = #tpu.pipeline_mode<synchronous>, transform_indices = @transform_6, window_bounds = array<i64: 1, 8>}, {pipeline_mode = #tpu.pipeline_mode<synchronous>, transform_indices = @transform_7, window_bounds = array<i64: 4, 8>}, {pipeline_mode = #tpu.pipeline_mode<synchronous>, transform_indices = @transform_8, window_bounds = array<i64: 1, 8>}, {pipeline_mode = #tpu.pipeline_mode<synchronous>, transform_indices = @transform_9, window_bounds = array<i64: 8, 16>}, {pipeline_mode = #tpu.pipeline_mode<synchronous>, transform_indices = @transform_10, window_bounds = array<i64: 8, 16>}, {pipeline_mode = #tpu.pipeline_mode<synchronous>, transform_indices = @transform_11, window_bounds = array<i64: 1, 16>}, {pipeline_mode = #tpu.pipeline_mode<synchronous>, transform_indices = @transform_12, window_bounds = array<i64: 16, 16>}, {pipeline_mode = #tpu.pipeline_mode<synchronous>, transform_indices = @transform_13, window_bounds = array<i64: 16, 16>}, {pipeline_mode = #tpu.pipeline_mode<synchronous>, transform_indices = @transform_14, window_bounds = array<i64: 1, 16>}, {pipeline_mode = #tpu.pipeline_mode<synchronous>, transform_indices = @transform_15, window_bounds = array<i64: 8, 16>}, {pipeline_mode = #tpu.pipeline_mode<synchronous>, transform_indices = @transform_16, window_bounds = array<i64: 1, 16>}, {pipeline_mode = #tpu.pipeline_mode<synchronous>, transform_indices = @transform_17, window_bounds = array<i64: 16, 2>}, {pipeline_mode = #tpu.pipeline_mode<synchronous>, transform_indices = @transform_18, window_bounds = array<i64: 1, 2>}, {transform_indices = @transform_19, window_bounds = array<i64: 1, 1, 2>}]} {
    %0 = tpu.iota {dimensions = array<i32: 0>} : vector<16x1xi32>
    %c15_i32 = arith.constant 15 : i32
    %1 = vector.broadcast %c15_i32 : i32 to vector<16x1xi32>
    %2 = arith.andi %0, %1 : vector<16x1xi32>
    %c0 = arith.constant 0 : index
    %c0_0 = arith.constant 0 : index
    %3 = vector.load %arg1[%c0, %c0_0] : memref<16x4xf32, #tpu.memory_space<vmem>>, vector<16x4xf32>
    %c1_i32 = arith.constant 1 : i32
    %4 = vector.broadcast %c1_i32 : i32 to vector<16x1xi32>
    %5 = arith.cmpi sge, %2, %4 : vector<16x1xi32>
    %c1_i32_1 = arith.constant 1 : i32
    %6 = tpu.dynamic_rotate %3 by %c1_i32_1 dim 0 : vector<16x4xf32>, i32 -> vector<16x4xf32>
    %cst = arith.constant 0.000000e+00 : f32
    %7 = vector.shape_cast %5 : vector<16x1xi1> to vector<16x1xi1>
    %8 = vector.broadcast %7 : vector<16x1xi1> to vector<16x4xi1>
    %9 = vector.broadcast %cst : f32 to vector<16x4xf32>
    %10 = arith.select %8, %6, %9 : vector<16x4xi1>, vector<16x4xf32>
    %c0_2 = arith.constant 0 : index
    %c0_3 = arith.constant 0 : index
    %11 = vector.load %arg2[%c0_2, %c0_3] : memref<4x8xf32, #tpu.memory_space<vmem>>, vector<4x8xf32>
    %cst_4 = arith.constant dense<0.000000e+00> : vector<16x8xf32>
    %12 = tpu.matmul %10, %11, %cst_4 {dimension_numbers = #tpu.dot_dimension_numbers<[1], [0], [0], [1], [0, 0, 1, 1], [], []>} : vector<16x4xf32>, vector<4x8xf32>, vector<16x8xf32> -> vector<16x8xf32>
    %c0_5 = arith.constant 0 : index
    %c0_6 = arith.constant 0 : index
    %13 = vector.load %arg3[%c0_5, %c0_6] : memref<4x8xf32, #tpu.memory_space<vmem>>, vector<4x8xf32>
    %cst_7 = arith.constant dense<0.000000e+00> : vector<16x8xf32>
    %14 = tpu.matmul %3, %13, %cst_7 {dimension_numbers = #tpu.dot_dimension_numbers<[1], [0], [0], [1], [0, 0, 1, 1], [], []>} : vector<16x4xf32>, vector<4x8xf32>, vector<16x8xf32> -> vector<16x8xf32>
    %15 = arith.addf %12, %14 : vector<16x8xf32>
    %c0_8 = arith.constant 0 : index
    %c0_9 = arith.constant 0 : index
    %16 = vector.load %arg4[%c0_8, %c0_9] : memref<1x8xf32, #tpu.memory_space<vmem>>, vector<1x8xf32>
    %17 = vector.broadcast %16 : vector<1x8xf32> to vector<16x8xf32>
    %18 = arith.addf %15, %17 : vector<16x8xf32>
    %cst_10 = arith.constant 0.000000e+00 : f32
    %19 = vector.broadcast %cst_10 : f32 to vector<16x8xf32>
    %20 = arith.maximumf %18, %19 : vector<16x8xf32>
    %c1_i32_11 = arith.constant 1 : i32
    %21 = tpu.dynamic_rotate %20 by %c1_i32_11 dim 0 : vector<16x8xf32>, i32 -> vector<16x8xf32>
    %cst_12 = arith.constant 0.000000e+00 : f32
    %22 = vector.shape_cast %5 : vector<16x1xi1> to vector<16x1xi1>
    %23 = vector.broadcast %22 : vector<16x1xi1> to vector<16x8xi1>
    %24 = vector.broadcast %cst_12 : f32 to vector<16x8xf32>
    %25 = arith.select %23, %21, %24 : vector<16x8xi1>, vector<16x8xf32>
    %c0_13 = arith.constant 0 : index
    %c0_14 = arith.constant 0 : index
    %26 = vector.load %arg5[%c0_13, %c0_14] : memref<8x8xf32, #tpu.memory_space<vmem>>, vector<8x8xf32>
    %cst_15 = arith.constant dense<0.000000e+00> : vector<16x8xf32>
    %27 = tpu.matmul %25, %26, %cst_15 {dimension_numbers = #tpu.dot_dimension_numbers<[1], [0], [0], [1], [0, 0, 1, 1], [], []>} : vector<16x8xf32>, vector<8x8xf32>, vector<16x8xf32> -> vector<16x8xf32>
    %c0_16 = arith.constant 0 : index
    %c0_17 = arith.constant 0 : index
    %28 = vector.load %arg6[%c0_16, %c0_17] : memref<8x8xf32, #tpu.memory_space<vmem>>, vector<8x8xf32>
    %cst_18 = arith.constant dense<0.000000e+00> : vector<16x8xf32>
    %29 = tpu.matmul %20, %28, %cst_18 {dimension_numbers = #tpu.dot_dimension_numbers<[1], [0], [0], [1], [0, 0, 1, 1], [], []>} : vector<16x8xf32>, vector<8x8xf32>, vector<16x8xf32> -> vector<16x8xf32>
    %30 = arith.addf %27, %29 : vector<16x8xf32>
    %c0_19 = arith.constant 0 : index
    %c0_20 = arith.constant 0 : index
    %31 = vector.load %arg7[%c0_19, %c0_20] : memref<1x8xf32, #tpu.memory_space<vmem>>, vector<1x8xf32>
    %32 = vector.broadcast %31 : vector<1x8xf32> to vector<16x8xf32>
    %33 = arith.addf %30, %32 : vector<16x8xf32>
    %cst_21 = arith.constant 0.000000e+00 : f32
    %34 = vector.broadcast %cst_21 : f32 to vector<16x8xf32>
    %35 = arith.maximumf %33, %34 : vector<16x8xf32>
    %c0_22 = arith.constant 0 : index
    %c0_23 = arith.constant 0 : index
    %36 = vector.load %arg8[%c0_22, %c0_23] : memref<4x8xf32, #tpu.memory_space<vmem>>, vector<4x8xf32>
    %cst_24 = arith.constant dense<0.000000e+00> : vector<16x8xf32>
    %37 = tpu.matmul %3, %36, %cst_24 {dimension_numbers = #tpu.dot_dimension_numbers<[1], [0], [0], [1], [0, 0, 1, 1], [], []>} : vector<16x4xf32>, vector<4x8xf32>, vector<16x8xf32> -> vector<16x8xf32>
    %c0_25 = arith.constant 0 : index
    %c0_26 = arith.constant 0 : index
    %38 = vector.load %arg9[%c0_25, %c0_26] : memref<1x8xf32, #tpu.memory_space<vmem>>, vector<1x8xf32>
    %39 = vector.broadcast %38 : vector<1x8xf32> to vector<16x8xf32>
    %40 = arith.addf %37, %39 : vector<16x8xf32>
    %41 = arith.addf %35, %40 : vector<16x8xf32>
    %cst_27 = arith.constant 0.000000e+00 : f32
    %42 = vector.broadcast %cst_27 : f32 to vector<16x8xf32>
    %43 = arith.maximumf %41, %42 : vector<16x8xf32>
    %c2_i32 = arith.constant 2 : i32
    %44 = vector.broadcast %c2_i32 : i32 to vector<16x1xi32>
    %45 = arith.cmpi sge, %2, %44 : vector<16x1xi32>
    %c2_i32_28 = arith.constant 2 : i32
    %46 = tpu.dynamic_rotate %43 by %c2_i32_28 dim 0 : vector<16x8xf32>, i32 -> vector<16x8xf32>
    %cst_29 = arith.constant 0.000000e+00 : f32
    %47 = vector.shape_cast %45 : vector<16x1xi1> to vector<16x1xi1>
    %48 = vector.broadcast %47 : vector<16x1xi1> to vector<16x8xi1>
    %49 = vector.broadcast %cst_29 : f32 to vector<16x8xf32>
    %50 = arith.select %48, %46, %49 : vector<16x8xi1>, vector<16x8xf32>
    %c0_30 = arith.constant 0 : index
    %c0_31 = arith.constant 0 : index
    %51 = vector.load %arg10[%c0_30, %c0_31] : memref<8x16xf32, #tpu.memory_space<vmem>>, vector<8x16xf32>
    %cst_32 = arith.constant dense<0.000000e+00> : vector<16x16xf32>
    %52 = tpu.matmul %50, %51, %cst_32 {dimension_numbers = #tpu.dot_dimension_numbers<[1], [0], [0], [1], [0, 0, 1, 1], [], []>} : vector<16x8xf32>, vector<8x16xf32>, vector<16x16xf32> -> vector<16x16xf32>
    %c0_33 = arith.constant 0 : index
    %c0_34 = arith.constant 0 : index
    %53 = vector.load %arg11[%c0_33, %c0_34] : memref<8x16xf32, #tpu.memory_space<vmem>>, vector<8x16xf32>
    %cst_35 = arith.constant dense<0.000000e+00> : vector<16x16xf32>
    %54 = tpu.matmul %43, %53, %cst_35 {dimension_numbers = #tpu.dot_dimension_numbers<[1], [0], [0], [1], [0, 0, 1, 1], [], []>} : vector<16x8xf32>, vector<8x16xf32>, vector<16x16xf32> -> vector<16x16xf32>
    %55 = arith.addf %52, %54 : vector<16x16xf32>
    %c0_36 = arith.constant 0 : index
    %c0_37 = arith.constant 0 : index
    %56 = vector.load %arg12[%c0_36, %c0_37] : memref<1x16xf32, #tpu.memory_space<vmem>>, vector<1x16xf32>
    %57 = vector.broadcast %56 : vector<1x16xf32> to vector<16x16xf32>
    %58 = arith.addf %55, %57 : vector<16x16xf32>
    %cst_38 = arith.constant 0.000000e+00 : f32
    %59 = vector.broadcast %cst_38 : f32 to vector<16x16xf32>
    %60 = arith.maximumf %58, %59 : vector<16x16xf32>
    %c2_i32_39 = arith.constant 2 : i32
    %61 = tpu.dynamic_rotate %60 by %c2_i32_39 dim 0 : vector<16x16xf32>, i32 -> vector<16x16xf32>
    %cst_40 = arith.constant 0.000000e+00 : f32
    %62 = vector.shape_cast %45 : vector<16x1xi1> to vector<16x1xi1>
    %63 = vector.broadcast %62 : vector<16x1xi1> to vector<16x16xi1>
    %64 = vector.broadcast %cst_40 : f32 to vector<16x16xf32>
    %65 = arith.select %63, %61, %64 : vector<16x16xi1>, vector<16x16xf32>
    %c0_41 = arith.constant 0 : index
    %c0_42 = arith.constant 0 : index
    %66 = vector.load %arg13[%c0_41, %c0_42] : memref<16x16xf32, #tpu.memory_space<vmem>>, vector<16x16xf32>
    %cst_43 = arith.constant dense<0.000000e+00> : vector<16x16xf32>
    %67 = tpu.matmul %65, %66, %cst_43 {dimension_numbers = #tpu.dot_dimension_numbers<[1], [0], [0], [1], [0, 0, 1, 1], [], []>} : vector<16x16xf32>, vector<16x16xf32>, vector<16x16xf32> -> vector<16x16xf32>
    %c0_44 = arith.constant 0 : index
    %c0_45 = arith.constant 0 : index
    %68 = vector.load %arg14[%c0_44, %c0_45] : memref<16x16xf32, #tpu.memory_space<vmem>>, vector<16x16xf32>
    %cst_46 = arith.constant dense<0.000000e+00> : vector<16x16xf32>
    %69 = tpu.matmul %60, %68, %cst_46 {dimension_numbers = #tpu.dot_dimension_numbers<[1], [0], [0], [1], [0, 0, 1, 1], [], []>} : vector<16x16xf32>, vector<16x16xf32>, vector<16x16xf32> -> vector<16x16xf32>
    %70 = arith.addf %67, %69 : vector<16x16xf32>
    %c0_47 = arith.constant 0 : index
    %c0_48 = arith.constant 0 : index
    %71 = vector.load %arg15[%c0_47, %c0_48] : memref<1x16xf32, #tpu.memory_space<vmem>>, vector<1x16xf32>
    %72 = vector.broadcast %71 : vector<1x16xf32> to vector<16x16xf32>
    %73 = arith.addf %70, %72 : vector<16x16xf32>
    %cst_49 = arith.constant 0.000000e+00 : f32
    %74 = vector.broadcast %cst_49 : f32 to vector<16x16xf32>
    %75 = arith.maximumf %73, %74 : vector<16x16xf32>
    %c0_50 = arith.constant 0 : index
    %c0_51 = arith.constant 0 : index
    %76 = vector.load %arg16[%c0_50, %c0_51] : memref<8x16xf32, #tpu.memory_space<vmem>>, vector<8x16xf32>
    %cst_52 = arith.constant dense<0.000000e+00> : vector<16x16xf32>
    %77 = tpu.matmul %43, %76, %cst_52 {dimension_numbers = #tpu.dot_dimension_numbers<[1], [0], [0], [1], [0, 0, 1, 1], [], []>} : vector<16x8xf32>, vector<8x16xf32>, vector<16x16xf32> -> vector<16x16xf32>
    %c0_53 = arith.constant 0 : index
    %c0_54 = arith.constant 0 : index
    %78 = vector.load %arg17[%c0_53, %c0_54] : memref<1x16xf32, #tpu.memory_space<vmem>>, vector<1x16xf32>
    %79 = vector.broadcast %78 : vector<1x16xf32> to vector<16x16xf32>
    %80 = arith.addf %77, %79 : vector<16x16xf32>
    %81 = arith.addf %75, %80 : vector<16x16xf32>
    %cst_55 = arith.constant 0.000000e+00 : f32
    %82 = vector.broadcast %cst_55 : f32 to vector<16x16xf32>
    %83 = arith.maximumf %81, %82 : vector<16x16xf32>
    %84 = vector.shape_cast %83 : vector<16x16xf32> to vector<1x16x16xf32>
    %cst_56 = arith.constant dense<0xFF800000> : vector<1x16xf32>
    %85 = vector.multi_reduction <maximumf>, %84, %cst_56 [1] : vector<1x16x16xf32> to vector<1x16xf32>
    %c0_57 = arith.constant 0 : index
    %c0_58 = arith.constant 0 : index
    %86 = vector.load %arg18[%c0_57, %c0_58] : memref<16x2xf32, #tpu.memory_space<vmem>>, vector<16x2xf32>
    %cst_59 = arith.constant dense<0.000000e+00> : vector<1x2xf32>
    %87 = tpu.matmul %85, %86, %cst_59 {dimension_numbers = #tpu.dot_dimension_numbers<[1], [0], [0], [1], [0, 0, 1, 1], [], []>} : vector<1x16xf32>, vector<16x2xf32>, vector<1x2xf32> -> vector<1x2xf32>
    %c0_60 = arith.constant 0 : index
    %c0_61 = arith.constant 0 : index
    %88 = vector.load %arg19[%c0_60, %c0_61] : memref<1x2xf32, #tpu.memory_space<vmem>>, vector<1x2xf32>
    %89 = arith.addf %87, %88 : vector<1x2xf32>
    %90 = vector.shape_cast %89 : vector<1x2xf32> to vector<1x1x2xf32>
    %c0_62 = arith.constant 0 : index
    %c0_63 = arith.constant 0 : index
    %c0_64 = arith.constant 0 : index
    %91 = vector.load %arg20[%c0_62, %c0_63, %c0_64] : memref<1x1x2xf32, #tpu.memory_space<vmem>>, vector<1x1x2xf32>
    tpu.vector_store %arg20[%c0_62, %c0_63, %c0_64], %90 {strides = array<i32>} : memref<1x1x2xf32, #tpu.memory_space<vmem>>, vector<1x1x2xf32>,
    return
  }
  func.func @transform_0(%arg0: i32) -> (i32, i32) {
    %c0_i32 = arith.constant 0 : i32
    %c0_i32_0 = arith.constant 0 : i32
    return %arg0, %c0_i32 : i32, i32
  }
  func.func @transform_1(%arg0: i32) -> (i32, i32) {
    %c0_i32 = arith.constant 0 : i32
    %c0_i32_0 = arith.constant 0 : i32
    %c0_i32_1 = arith.constant 0 : i32
    return %c0_i32, %c0_i32_0 : i32, i32
  }
  func.func @transform_2(%arg0: i32) -> (i32, i32) {
    %c0_i32 = arith.constant 0 : i32
    %c0_i32_0 = arith.constant 0 : i32
    %c0_i32_1 = arith.constant 0 : i32
    return %c0_i32, %c0_i32_0 : i32, i32
  }
  func.func @transform_3(%arg0: i32) -> (i32, i32) {
    %c0_i32 = arith.constant 0 : i32
    %c0_i32_0 = arith.constant 0 : i32
    %c0_i32_1 = arith.constant 0 : i32
    return %c0_i32, %c0_i32_0 : i32, i32
  }
  func.func @transform_4(%arg0: i32) -> (i32, i32) {
    %c0_i32 = arith.constant 0 : i32
    %c0_i32_0 = arith.constant 0 : i32
    %c0_i32_1 = arith.constant 0 : i32
    return %c0_i32, %c0_i32_0 : i32, i32
  }
  func.func @transform_5(%arg0: i32) -> (i32, i32) {
    %c0_i32 = arith.constant 0 : i32
    %c0_i32_0 = arith.constant 0 : i32
    %c0_i32_1 = arith.constant 0 : i32
    return %c0_i32, %c0_i32_0 : i32, i32
  }
  func.func @transform_6(%arg0: i32) -> (i32, i32) {
    %c0_i32 = arith.constant 0 : i32
    %c0_i32_0 = arith.constant 0 : i32
    %c0_i32_1 = arith.constant 0 : i32
    return %c0_i32, %c0_i32_0 : i32, i32
  }
  func.func @transform_7(%arg0: i32) -> (i32, i32) {
    %c0_i32 = arith.constant 0 : i32
    %c0_i32_0 = arith.constant 0 : i32
    %c0_i32_1 = arith.constant 0 : i32
    return %c0_i32, %c0_i32_0 : i32, i32
  }
  func.func @transform_8(%arg0: i32) -> (i32, i32) {
    %c0_i32 = arith.constant 0 : i32
    %c0_i32_0 = arith.constant 0 : i32
    %c0_i32_1 = arith.constant 0 : i32
    return %c0_i32, %c0_i32_0 : i32, i32
  }
  func.func @transform_9(%arg0: i32) -> (i32, i32) {
    %c0_i32 = arith.constant 0 : i32
    %c0_i32_0 = arith.constant 0 : i32
    %c0_i32_1 = arith.constant 0 : i32
    return %c0_i32, %c0_i32_0 : i32, i32
  }
  func.func @transform_10(%arg0: i32) -> (i32, i32) {
    %c0_i32 = arith.constant 0 : i32
    %c0_i32_0 = arith.constant 0 : i32
    %c0_i32_1 = arith.constant 0 : i32
    return %c0_i32, %c0_i32_0 : i32, i32
  }
  func.func @transform_11(%arg0: i32) -> (i32, i32) {
    %c0_i32 = arith.constant 0 : i32
    %c0_i32_0 = arith.constant 0 : i32
    %c0_i32_1 = arith.constant 0 : i32
    return %c0_i32, %c0_i32_0 : i32, i32
  }
  func.func @transform_12(%arg0: i32) -> (i32, i32) {
    %c0_i32 = arith.constant 0 : i32
    %c0_i32_0 = arith.constant 0 : i32
    %c0_i32_1 = arith.constant 0 : i32
    return %c0_i32, %c0_i32_0 : i32, i32
  }
  func.func @transform_13(%arg0: i32) -> (i32, i32) {
    %c0_i32 = arith.constant 0 : i32
    %c0_i32_0 = arith.constant 0 : i32
    %c0_i32_1 = arith.constant 0 : i32
    return %c0_i32, %c0_i32_0 : i32, i32
  }
  func.func @transform_14(%arg0: i32) -> (i32, i32) {
    %c0_i32 = arith.constant 0 : i32
    %c0_i32_0 = arith.constant 0 : i32
    %c0_i32_1 = arith.constant 0 : i32
    return %c0_i32, %c0_i32_0 : i32, i32
  }
  func.func @transform_15(%arg0: i32) -> (i32, i32) {
    %c0_i32 = arith.constant 0 : i32
    %c0_i32_0 = arith.constant 0 : i32
    %c0_i32_1 = arith.constant 0 : i32
    return %c0_i32, %c0_i32_0 : i32, i32
  }
  func.func @transform_16(%arg0: i32) -> (i32, i32) {
    %c0_i32 = arith.constant 0 : i32
    %c0_i32_0 = arith.constant 0 : i32
    %c0_i32_1 = arith.constant 0 : i32
    return %c0_i32, %c0_i32_0 : i32, i32
  }
  func.func @transform_17(%arg0: i32) -> (i32, i32) {
    %c0_i32 = arith.constant 0 : i32
    %c0_i32_0 = arith.constant 0 : i32
    %c0_i32_1 = arith.constant 0 : i32
    return %c0_i32, %c0_i32_0 : i32, i32
  }
  func.func @transform_18(%arg0: i32) -> (i32, i32) {
    %c0_i32 = arith.constant 0 : i32
    %c0_i32_0 = arith.constant 0 : i32
    %c0_i32_1 = arith.constant 0 : i32
    return %c0_i32, %c0_i32_0 : i32, i32
  }
  func.func @transform_19(%arg0: i32) -> (i32, i32, i32) {
    %c0_i32 = arith.constant 0 : i32
    %c0_i32_0 = arith.constant 0 : i32
    %c0_i32_1 = arith.constant 0 : i32
    return %arg0, %c0_i32, %c0_i32_0 : i32, i32, i32
  }
}

</mosaic_0001>

<bundles_post_ra>
// kernel: tpu_custom_call.1
= control target key start
LH: loop header
LB: loop body
LE: loop exit
PB: predicated region body
PF: predicated region fallthrough
CT: control target
= control target key end

     0   :  { %s2094_s0 = inlined_call_operand.vmem [shape: f32[32,4], index: 0, kind: input, shape index: {}]   ;;  %s2095_s1 = inlined_call_operand.hbm [shape: f32[4,8], index: 1, kind: input, shape index: {}]   ;;  %s2096_s2 = inlined_call_operand.hbm [shape: f32[4,8], index: 2, kind: input, shape index: {}]   ;;  %s2097_s3 = inlined_call_operand.vmem [shape: f32[1,8], index: 3, kind: input, shape index: {}]   ;;  %s2098_s4 = inlined_call_operand.vmem [shape: f32[8,8], index: 4, kind: input, shape index: {}]   ;;  %s2099_s5 = inlined_call_operand.vmem [shape: f32[8,8], index: 5, kind: input, shape index: {}]   ;;  %s2100_s6 = inlined_call_operand.vmem [shape: f32[1,8], index: 6, kind: input, shape index: {}]   ;;  %s2101_s7 = inlined_call_operand.hbm [shape: f32[4,8], index: 7, kind: input, shape index: {}]   ;;  %s2102_s8 = inlined_call_operand.hbm [shape: f32[1,8], index: 8, kind: input, shape index: {}]   ;;  %s2103_s9 = inlined_call_operand.hbm [shape: f32[8,16], index: 9, kind: input, shape index: {}]   ;;  %s2104_s10 = inlined_call_operand.hbm [shape: f32[8,16], index: 10, kind: input, shape index: {}]   ;;  %s2105_s11 = inlined_call_operand.hbm [shape: f32[1,16], index: 11, kind: input, shape index: {}]   ;;  %s2106_s12 = inlined_call_operand.vmem [shape: f32[16,16], index: 12, kind: input, shape index: {}]   ;;  %s2107_s13 = inlined_call_operand.vmem [shape: f32[16,16], index: 13, kind: input, shape index: {}]   ;;  %s2108_s14 = inlined_call_operand.vmem [shape: f32[1,16], index: 14, kind: input, shape index: {}]   ;;  %s2109_s15 = inlined_call_operand.vmem [shape: f32[8,16], index: 15, kind: input, shape index: {}]   ;;  %s2110_s16 = inlined_call_operand.vmem [shape: f32[1,16], index: 16, kind: input, shape index: {}]   ;;  %s2111_s17 = inlined_call_operand.vmem [shape: f32[16,2], index: 17, kind: input, shape index: {}]   ;;  %s2112_s18 = inlined_call_operand.vmem [shape: f32[1,2], index: 18, kind: input, shape index: {}]   ;;  %s2113_s19 = inlined_call_operand.hbm [shape: f32[2,1,2], index: 19, kind: output, shape index: {}]  }
   0x1   :  { %2123 = sst [smem:[#allocation27_spill]] %s2094_s0 }
   0x2   :  { %2124 = sst [smem:[#allocation28_spill]] %s2095_s1 }
   0x3   :  { %2125 = sst [smem:[#allocation29_spill]] %s2096_s2 }
   0x4   :  { %2126 = sst [smem:[#allocation30_spill]] %s2097_s3 }
   0x5   :  { %2127 = sst [smem:[#allocation31_spill]] %s2102_s8 }
   0x6   :  { %2128 = sst [smem:[#allocation32_spill]] %s2112_s18 }
   0x7   :  { %2129 = sst [smem:[#allocation33_spill]] %s2113_s19 }
   0x8   :  { %24 = vsyncpa [#allocation3], 0 }
   0x9   :  { %25 = vsyncpa [#allocation6], 0 }
   0xa   :  { %26 = vsyncpa [#allocation9], 0 }
   0xb   :  { %27 = vsyncpa [#allocation12], 0 }
   0xc   :  { %28 = vsyncpa [#allocation4], 0 }
   0xd   :  { %30 = vsyncpa [#allocation4 + $0x1], 0  ;;  %s1834_s0 = smov 0   ;;  %s1836_s30 = smov 0  }
   0xe   :  { %s1838_s20 = smov 0   ;;  %s1840_s21 = smov 0  }
   0xf LB: > { %2130 = sst [smem:[#allocation20_spill]] %s1713_s0  ;;  %s1855_s1 = sadd.s32 4294967295, %s1725_s21   ;;  %s1725_s21 = sphi %s1840_s21, %s2156_s21   ;;  %s1721_s20 = sphi %s1838_s20, %s2158_s20   ;;  %s1717_s30 = sphi %s1836_s30, %s2160_s30   ;;  %s1713_s0 = sphi %s1834_s0, %s2159_s0  }
  0x10   : > { %2131 = sst [smem:[#allocation21_spill]] %s1721_s20  ;;  %s1274_s22 = sadd.s32 4294967294, %s1725_s21  }
  0x11   : > { %2132 = sst [smem:[#allocation22_spill]] %s1725_s21  ;;  %s1859_s2 = sadd.s32 1, %s1725_s21  }
  0x12   : > { %2133 = sst [smem:[#allocation23_spill]] %s1859_s2  ;;  %s447_s23 = sadd.s32 1, %s1721_s20 }
  0x13   : > { %s444_s24 = ssub.s32 %s1725_s21, %s1859_s2  ;;  %p457_p0 = scmp.ne.s32.totalorder %s1721_s20, %s1717_s30 }
  0x14   : > { %p445_p1 = scmp.eq.s32.totalorder %s444_s24, 0  ;;  %p458_p2 = scmp.eq.s32.totalorder %s1855_s1, 1 }
  0x15   : > { %p463_p3 = scmp.ne.s32.totalorder %s1717_s30, %s1713_s0  ;;  %p464_p4 = scmp.eq.s32.totalorder %s1274_s22, 1 }
  0x16   : > { %s1870_s25 = scalar_select %p445_p1, %s1721_s20, %s447_s23  }
  0x17   : > { %p1872_p5 = por %p458_p2, %p457_p0  ;;  %p1876_p6 = por %p464_p4, %p463_p3 }
  0x18   : > { %2134 = sst [smem:[#allocation24_spill]] %s1870_s25  ;;  %p1275_p7 = scmp.ge.s32.totalorder %s1725_s21, 1 }
  0x19   : > { %s2135_s3 = scalar_select %p1872_p5, 1, 0 }
  0x1a   : > { %s2137_s26 = scalar_select %p1876_p6, 1, 0 }
  0x1b   : > { %2136 = sst [smem:[#allocation25_spill]] %s2135_s3  ;;  %p471_p8 = scmp.lt.s32.totalorder %s1725_s21, 3 }
  0x1c   : > { %2138 = sst [smem:[#allocation26_spill]] %s2137_s26  ;;  %p1377_p9 = scmp.eq.s32.totalorder %s1855_s1, 0 }
  0x1d   : > { %p1883_p10 = pnand %p1275_p7, %p471_p8  ;;  %s2140_s22 = sld [smem:[#allocation29_spill]] }
  0x1e   : > { %s1727_s24 = smov [#allocation5]   ;;  %s2141_s8 = sld [smem:[#allocation31_spill]] }
  0x1f   : > { %p1351_p11 = pneg %p1883_p10  ;;  %s497_s25 = sshll.u32 %s1727_s24, 4  ;;  %s498_s25 = int_to_ptr.vmem [resolvable:$true] %s497_s25 }
  0x20   : > { %s1728_s21 = smov [#allocation8]   ;;  %s1729_s18 = smov [#allocation11]  }
  0x21   : > { %p1897_p12 = pnand %p1377_p9, %p1351_p11  ;;  %s533_s24 = sshll.u32 %s1728_s21, 4  ;;  %s534_s24 = int_to_ptr.vmem [resolvable:$true] %s533_s24 }
  0x22   : > { %s557_s19 = sshll.u32 %s1729_s18, 4  ;;  %s1730_s28 = smov [#allocation2]   ;;  %s558_s19 = int_to_ptr.vmem [resolvable:$true] %s557_s19 }
  0x23   : > { %s495_s23 = sshll.u32 %s2140_s22, 4  ;;  %s555_s22 = sshll.u32 %s2104_s10, 4  ;;  %s496_s23 = int_to_ptr.hbm [resolvable:$true] %s495_s23  ;;  %s556_s22 = int_to_ptr.hbm [resolvable:$true] %s555_s22 }
  0x24   : > { %s531_s26 = sshll.u32 %s2141_s8, 4  ;;  %s2143_s8 = sld [smem:[#allocation28_spill]]  ;;  %s532_s26 = int_to_ptr.hbm [resolvable:$true] %s531_s26 }
  0x25   : > { %1357 = dma.hbm_to_vmem [thread:$0]  (!%p1897_p12), %s496_s23, 64, %s498_s25, [#allocation6]  }
  0x26   : > { %1363 = dma.hbm_to_vmem [thread:$0]  (!%p1897_p12), %s532_s26, 16, %s534_s24, [#allocation9]  }
  0x27   : > { %1369 = dma.hbm_to_vmem [thread:$0]  (!%p1897_p12), %s556_s22, 128, %s558_s19, [#allocation12]  }
  0x28   : > { %s485_s21 = sshll.u32 %s1730_s28, 4  ;;  %s519_s23 = sshll.u32 %s2101_s7, 4  ;;  %s486_s21 = int_to_ptr.vmem [resolvable:$true] %s485_s21  ;;  %s520_s23 = int_to_ptr.hbm [resolvable:$true] %s519_s23 }
  0x29   : > { %s543_s18 = sshll.u32 %s2103_s9, 4  ;;  %s1731_s24 = smov [#allocation7]   ;;  %s544_s18 = int_to_ptr.hbm [resolvable:$true] %s543_s18 }
  0x2a   : > { %s483_s3 = sshll.u32 %s2143_s8, 4  ;;  %s521_s20 = sshll.u32 %s1731_s24, 4  ;;  %s484_s3 = int_to_ptr.hbm [resolvable:$true] %s483_s3  ;;  %s522_s20 = int_to_ptr.vmem [resolvable:$true] %s521_s20 }
  0x2b   : > { %1354 = dma.hbm_to_vmem [thread:$0]  (!%p1897_p12), %s484_s3, 64, %s486_s21, [#allocation3]  }
  0x2c   : > { %1360 = dma.hbm_to_vmem [thread:$0]  (!%p1897_p12), %s520_s23, 64, %s522_s20, [#allocation6]  }
  0x2d   : > { %s1732_s19 = smov [#allocation10]   ;;  %s567_s29 = sshll.u32 %s2105_s11, 4  ;;  %s568_s29 = int_to_ptr.hbm [resolvable:$true] %s567_s29 }
  0x2e   : > { %s545_s22 = sshll.u32 %s1732_s19, 4  ;;  %s1733_s3 = smov [#allocation13]   ;;  %s546_s22 = int_to_ptr.vmem [resolvable:$true] %s545_s22 }
  0x2f   : > { %1366 = dma.hbm_to_vmem [thread:$0]  (!%p1897_p12), %s544_s18, 128, %s546_s22, [#allocation9]  }
  0x30   : > { %s569_s21 = sshll.u32 %s1733_s3, 4  ;;  %612 = sbr.rel (%p1883_p10) target bundleno = 816 (0x330), region = 96  ;;  %s570_s21 = int_to_ptr.vmem [resolvable:$true] %s569_s21 }
  0x31   : > { %1372 = dma.hbm_to_vmem [thread:$0]  (!%p1897_p12), %s568_s29, 16, %s570_s21, [#allocation12]  }
  0x35   : > { %1692 = dma.done.wait (%p1377_p9), [#allocation3], 64  }
  0x36   : > { %1694 = vsyncadd (%p1377_p9), [#allocation3], 4294967232 }
  0x37   : > { %1696 = dma.done.wait (%p1377_p9), [#allocation6], 128  }
  0x38   : > { %1698 = vsyncadd (%p1377_p9), [#allocation6], 4294967168 }
  0x39   : > { %1700 = dma.done.wait (%p1377_p9), [#allocation9], 144  }
  0x3a   : > { %1702 = vsyncadd (%p1377_p9), [#allocation9], 4294967152 }
  0x3b   : > { %1704 = dma.done.wait (%p1377_p9), [#allocation12], 144  }
  0x3c   : > { %1706 = vsyncadd (%p1377_p9), [#allocation12], 4294967152  ;;  %s1292_s0 = sshll.u32 %s1855_s1, 1  ;;  %v704_v0 = vlaneseq  ;;  %vm733_vm0 = vcmask 1043456   ;;  %s2144_s26 = sld [smem:[#allocation27_spill]]  ;;  %vm726_vm1 = vcmask 31744  }
  0x3d   : > { %p699_p13 = scmp.lt.s32.totalorder %s1292_s0, 3  ;;  %v725_v3 = vld [vmem:[#allocation5] sm:$0xf]  ;;  %v724_v4 = vld [vmem:[#allocation2] sm:$0xf]  ;;  %s2147_s28 = sld [smem:[#allocation30_spill]] }
  0x3e   : > { %v1949_v1 = vshrl.u32 %v704_v0, 7  ;;  %1294 = vmatpush.msk.msra.mxu0 %vm733_vm0, %v725_v3  ;;  %1297 = vmatpush.msk.msra.mxu1 %vm733_vm0, %v724_v4  ;;  %v807_v13 = vld [vmem:[%s2099_s5] sm:$0xff]  ;;  %v875_v15 = vld [vmem:[#allocation7] sm:$0xf]  ;;  %vm808_vm4 = vcmask 64512   ;;  %v924_v32 = vld [vmem:[#allocation11] sm:$0xff] }
  0x3f   : > { %s2162_s0 = smov (!%p699_p13, %s1292_s0), 3  ;;  %1320 = vmatpush.msk.msra.mxu3 %vm733_vm0, %v725_v3  ;;  %830 = vmatpush.msra.mxu2 %v807_v13  ;;  %v806_v14 = vld [vmem:[%s2098_s4] sm:$0xff]  ;;  %v923_v33 = vld [vmem:[#allocation10] sm:$0xff]  ;;  %v1433_v38 = vld [vmem:[#allocation8] ss:$0 sm:$0xff]  ;;  %vm1001_vm7 = vcmask 130048  }
  0x40   : > { %s1293_s27 = sshll.u32 %s2162_s0, 3  ;;  %v707_v2 = vand.u32 15, %v1949_v1  ;;  %vm715_vm2 = vcmp.lt.s32.totalorder %v1949_v1, 1  ;;  %1304 = vmatpush.msk.msrb.mxu0 %vm733_vm0, %v875_v15  ;;  %946 = vmatpush.msrb.mxu1 %v924_v32  ;;  %v1068_v34 = vld [vmem:[%s2109_s15] sm:$0xff]  ;;  %vm914_vm5 = vcmp.lt.s32.totalorder %v1949_v1, 2  ;;  %v1000_v61 = vld [vmem:[%s2107_s13 + $0x8] sm:$0xff] }
  0x41   : > { %859 = vmatpush.msrb.mxu3 %v806_v14  ;;  %975 = vmatpush.msrb.mxu2 %v923_v33  ;;  %v1432_v37 = vld [vmem:[%s2100_s6] ss:$0 sm:$0xff]  ;;  %v998_v63 = vld [vmem:[%s2106_s12 + $0x8] sm:$0xff]  ;;  %v1435_v3 = vld [vmem:[#allocation13] ss:$0 sm:$0xff]  ;;  %s2151_s20 = sld [smem:[#allocation32_spill]] }
  0x42   : > { %s702_s8 = scalar_lea.vmem %s2144_s26, %s1293_s27  ;;  %vm1961_vm3 = vcmp.ge.s32.totalorder %v707_v2, 1  ;;  %vm2008_vm6 = vcmp.ge.s32.totalorder %v707_v2, 2  ;;  %v999_v62 = vld [vmem:[%s2107_s13] sm:$0xff]  ;;  %s696_s27 = sand.u32 1, %s1717_s30   ;;  %vm1135_vm8 = vcmask 8192  }
  0x43   : > { %v709_v5 = vld [vmem:[%s702_s8] sm:$0xff]  ;;  %v710_v6 = vld [vmem:[%s702_s8 + $0x8] sm:$0xff]  ;;  %s2150_s26 = sld [smem:[#allocation33_spill]]  ;;  %s697_s22 = scalar_lea.vmem [#allocation14], %s696_s27 }
  0x44   : > { %v713_v7 = vrot.slane %v709_v5, 7  ;;  %v714_v8 = vrot.slane %v710_v6, 7  ;;  %1295 = vmatmul.msk.f32.vlgmr.msra.gmra.mxu0 %vm726_vm1, %v709_v5  ;;  %1296 = vmatmul.msk.f32.vlgmr.msra.gmra.mxu3 %vm726_vm1, %v710_v6  ;;  %v1431_v17 = vld [vmem:[%s2147_s28] ss:$0 sm:$0xff]  ;;  %s1148_s2 = sshll.u32 %s697_s22, 4  ;;  %s1138_s29 = scalar_lea.sflag [#allocation4], %s696_s27  ;;  %s1149_s2 = int_to_ptr.vmem [resolvable:$true] %s1148_s2 }
  0x45   : > { %1022 = vmatpush.msra.mxu3 %v1000_v61  ;;  %1051 = vmatpush.msra.mxu0 %v998_v63  ;;  %v997_v0 = vld [vmem:[%s2106_s12] sm:$0xff] }
  0x46   : > { %v717_v10 = vsel %vm715_vm2, %v714_v8, %v713_v7  ;;  %v716_v12 = vsel %vm715_vm2, %v713_v7, %v714_v8 }
  0x47   : > { %v722_v11 = vsel %vm1961_vm3, %v717_v10, 0.0  ;;  %1023 = vmatpush.msra.mxu3 %v999_v62  ;;  %1052 = vmatpush.msra.mxu0 %v997_v0 }
  0x48   : > { %1298 = vmatmul.msk.f32.vlgmr.msra.gmra.mxu1 %vm726_vm1, %v722_v11 }
  0x49   : > { %1088 = vmatpush.msra.mxu1 %v1068_v34  ;;  %s1146_s8 = scalar_lea.hbm %s2150_s26, %s1855_s1  ;;  %s1667_s25 = scalar_lea.hbm %s2150_s26, 2 }
  0x4a   : > { %s1150_s28 = sshll.u32 %s1146_s8, 4  ;;  %s1151_s28 = int_to_ptr.hbm [resolvable:$true] %s1150_s28 }
  0x4b   : > { %s1661_s3 = sshra.s32 %s1151_s28, 4  ;;  %s1662_s3 = int_to_ptr.hbm [resolvable:$true] %s1661_s3 }
  0x4c   : > { %1305 = vmatmul.msk.f32.vlgmr.msrb.gmra.mxu0 %vm726_vm1, %v709_v5  ;;  %s1663_s21 = scalar_lea.hbm %s1662_s3, 1  ;;  %p1668_p3 = scmp.lt.s32.totalorder %s1662_s3, %s2150_s26 }
  0x4d   : > { %p1664_p0 = scmp.ne.s32.totalorder %s1662_s3, %s1663_s21  ;;  %p1669_p4 = scmp.lt.s32.totalorder %s1667_s25, %s1663_s21 }
  0x4f   : > { %p1665_p1 = pnand %p1664_p0, %p1872_p5  ;;  %p1670_p7 = por %p1669_p4, %p1668_p3 }
  0x50   : > { %1299 = vmatmul.msk.f32.gmra.mxu1 %vm726_vm1, %v716_v12 }
  0x51   : > { %p1666_p2 = pneg %p1665_p1 }
  0x53   : > { %p1671_p8 = pnand %p1670_p7, %p1666_p2 }
  0x54   : > { %1306 = vmatmul.msk.f32.gmra.mxu0 %vm726_vm1, %v710_v6 }
  0xc1   : > { %v754_v16 = vpop.f32.mrf.mxu0 }
  0xc5   : > { %v786_v18 = vpop.f32.mrf.mxu1 }
  0xc6   : > { %v787_v19 = vadd.f32 %v786_v18, %v754_v16  ;;  %v1110_v18 = vld [vmem:[%s2111_s17 + $0x8] sm:$0xff] }
  0xc7   : > { %v757_v22 = vpop.f32.mrf.mxu3 }
  0xc8   : > { %v796_v20 = vadd.f32 %v1431_v17, %v787_v19  ;;  %v1109_v19 = vld [vmem:[%s2111_s17] sm:$0xff] }
  0xc9   : > { %v900_v35 = vpop.f32.mrf.mxu0 }
  0xca   : > { %v798_v21 = vmax.f32 %v796_v20, 0.0  ;;  %v901_v42 = vadd.f32 %v1433_v38, %v900_v35 }
  0xcc   : > { %1300 = vmatmul.msk.f32.vlgmr.msra.gmra.mxu2 %vm808_vm4, %v798_v21  ;;  %v800_v27 = vrot.slane %v798_v21, 7  ;;  %v1436_v21 = vld [vmem:[%s2108_s14] ss:$0 sm:$0xff] }
  0xcd   : > { %v789_v23 = vpop.f32.mrf.mxu1  ;;  %1129 = vmatpush.msra.mxu2 %v1110_v18 }
  0xce   : > { %v790_v24 = vadd.f32 %v789_v23, %v757_v22 }
  0xcf   : > { %1130 = vmatpush.msra.mxu2 %v1109_v19 }
  0xd0   : > { %v797_v25 = vadd.f32 %v1431_v17, %v790_v24 }
  0xd1   : > { %v903_v45 = vpop.f32.mrf.mxu0 }
  0xd2   : > { %v799_v26 = vmax.f32 %v797_v25, 0.0  ;;  %v904_v51 = vadd.f32 %v1433_v38, %v903_v45  ;;  %v1434_v25 = vld [vmem:[%s2110_s16] ss:$0 sm:$0xff] }
  0xd4   : > { %v801_v28 = vrot.slane %v799_v26, 7  ;;  %1301 = vmatmul.msk.f32.gmra.mxu2 %vm808_vm4, %v799_v26 }
  0xd6   : > { %v803_v29 = vsel %vm715_vm2, %v801_v28, %v800_v27  ;;  %v802_v31 = vsel %vm715_vm2, %v800_v27, %v801_v28 }
  0xd7   : > { %v804_v30 = vsel %vm1961_vm3, %v803_v29, 0.0 }
  0xd8   : > { %1302 = vmatmul.msk.f32.vlgmr.msrb.gmra.mxu3 %vm808_vm4, %v804_v30 }
  0xe0   : > { %1303 = vmatmul.msk.f32.gmra.mxu3 %vm808_vm4, %v802_v31 }
 0x14f   : > { %v832_v36 = vpop.f32.mrf.mxu2 }
 0x157   : > { %v835_v46 = vpop.f32.mrf.mxu2 }
 0x15b   : > { %v861_v39 = vpop.f32.mrf.mxu3 }
 0x15c   : > { %v862_v40 = vadd.f32 %v861_v39, %v832_v36 }
 0x15e   : > { %v871_v41 = vadd.f32 %v1432_v37, %v862_v40 }
 0x160   : > { %v873_v43 = vmax.f32 %v871_v41, 0.0 }
 0x162   : > { %v906_v44 = vadd.f32 %v901_v42, %v873_v43 }
 0x163   : > { %v864_v47 = vpop.f32.mrf.mxu3 }
 0x164   : > { %v908_v48 = vmax.f32 %v906_v44, 0.0  ;;  %v865_v49 = vadd.f32 %v864_v47, %v835_v46 }
 0x166   : > { %v872_v50 = vadd.f32 %v1432_v37, %v865_v49  ;;  %1307 = vmatmul.msk.f32.vlgmr.msrb.gmra.mxu1 %vm808_vm4, %v908_v48  ;;  %v912_v55 = vrot.slane %v908_v48, 6 }
 0x168   : > { %v874_v52 = vmax.f32 %v872_v50, 0.0 }
 0x16a   : > { %v907_v53 = vadd.f32 %v904_v51, %v874_v52 }
 0x16c   : > { %v909_v54 = vmax.f32 %v907_v53, 0.0 }
 0x16e   : > { %v913_v56 = vrot.slane %v909_v54, 6  ;;  %1308 = vmatmul.msk.f32.gmra.mxu1 %vm808_vm4, %v909_v54 }
 0x170   : > { %v916_v58 = vsel %vm914_vm5, %v913_v56, %v912_v55  ;;  %v915_v60 = vsel %vm914_vm5, %v912_v55, %v913_v56 }
 0x171   : > { %v921_v59 = vsel %vm2008_vm6, %v916_v58, 0.0 }
 0x172   : > { %1309 = vmatmul.msk.f32.vlgmr.msrb.gmra.mxu2 %vm808_vm4, %v921_v59 }
 0x176   : > { %1315 = vmatmul.msk.f32.vlgmr.msra.gmra.mxu1 %vm808_vm4, %v908_v48  ;;  %v1111_v48 = vld [vmem:[%s2151_s20] sm:$0x1] }
 0x17a   : > { %1310 = vmatmul.msk.f32.gmra.mxu2 %vm808_vm4, %v915_v60 }
 0x17e   : > { %1316 = vmatmul.msk.f32.gmra.mxu1 %vm808_vm4, %v909_v54 }
 0x1e3   : > { %v948_v2 = vpop.f32.mrf.mxu1 }
 0x1eb   : > { %v951_v8 = vpop.f32.mrf.mxu1 }
 0x1f3   : > { %v1090_v22 = vpop.f32.mrf.mxu1 }
 0x1f4   : > { %v1091_v29 = vadd.f32 %v1434_v25, %v1090_v22 }
 0x1f5   : > { %v977_v4 = vpop.f32.mrf.mxu2 }
 0x1f6   : > { %v978_v5 = vadd.f32 %v977_v4, %v948_v2 }
 0x1f8   : > { %v987_v6 = vadd.f32 %v1435_v3, %v978_v5 }
 0x1fa   : > { %v989_v7 = vmax.f32 %v987_v6, 0.0 }
 0x1fb   : > { %v1093_v31 = vpop.f32.mrf.mxu1 }
 0x1fc   : > { %1311 = vmatmul.msk.f32.vlgmr.msra.gmra.mxu3 %vm1001_vm7, %v989_v7  ;;  %v991_v13 = vrot.slane %v989_v7, 6  ;;  %v1094_v34 = vadd.f32 %v1434_v25, %v1093_v31 }
 0x1fd   : > { %v980_v9 = vpop.f32.mrf.mxu2 }
 0x1fe   : > { %v981_v10 = vadd.f32 %v980_v9, %v951_v8 }
 0x200   : > { %v988_v11 = vadd.f32 %v1435_v3, %v981_v10 }
 0x202   : > { %v990_v12 = vmax.f32 %v988_v11, 0.0 }
 0x204   : > { %v992_v14 = vrot.slane %v990_v12, 6  ;;  %1312 = vmatmul.msk.f32.gmra.mxu3 %vm1001_vm7, %v990_v12 }
 0x206   : > { %v994_v15 = vsel %vm914_vm5, %v992_v14, %v991_v13  ;;  %v993_v17 = vsel %vm914_vm5, %v991_v13, %v992_v14 }
 0x207   : > { %v995_v16 = vsel %vm2008_vm6, %v994_v15, 0.0 }
 0x208   : > { %1313 = vmatmul.msk.f32.vlgmr.msra.gmra.mxu0 %vm1001_vm7, %v995_v16 }
 0x210   : > { %1314 = vmatmul.msk.f32.gmra.mxu0 %vm1001_vm7, %v993_v17 }
 0x27f   : > { %v1025_v20 = vpop.f32.mrf.mxu3 }
 0x285   : > { %v1054_v1 = vpop.f32.mrf.mxu0 }
 0x286   : > { %v1055_v23 = vadd.f32 %v1054_v1, %v1025_v20 }
 0x287   : > { %v1028_v27 = vpop.f32.mrf.mxu3 }
 0x288   : > { %v1064_v24 = vadd.f32 %v1436_v21, %v1055_v23 }
 0x28a   : > { %v1066_v26 = vmax.f32 %v1064_v24, 0.0 }
 0x28c   : > { %v1096_v32 = vadd.f32 %v1091_v29, %v1066_v26 }
 0x28d   : > { %v1057_v28 = vpop.f32.mrf.mxu0 }
 0x28e   : > { %v1058_v30 = vadd.f32 %v1057_v28, %v1028_v27  ;;  %v1098_v36 = vmax.f32 %v1096_v32, 0.0 }
 0x290   : > { %v1065_v33 = vadd.f32 %v1436_v21, %v1058_v30  ;;  %v1100_v39 = vsel %vm1001_vm7, %v1098_v36, -inf }
 0x292   : > { %v1067_v35 = vmax.f32 %v1065_v33, 0.0 }
 0x294   : > { %v1097_v37 = vadd.f32 %v1094_v34, %v1067_v35 }
 0x296   : > { %v1099_v38 = vmax.f32 %v1097_v37, 0.0 }
 0x298   : > { %v1101_v40 = vsel %vm1001_vm7, %v1099_v38, -inf }
 0x299   : > { %v1102_v41 = vmax.f32 %v1100_v39, %v1101_v40 }
 0x29b   : > { %v1103_v42 = vrot.slane %v1102_v41, 4 }
 0x29d   : > { %v1104_v43 = vmax.f32 %v1102_v41, %v1103_v42 }
 0x29f   : > { %v1105_v44 = vrot.slane %v1104_v43, 2 }
 0x2a1   : > { %v1106_v45 = vmax.f32 %v1104_v43, %v1105_v44 }
 0x2a3   : > { %v1107_v46 = vrot.slane %v1106_v45, 1 }
 0x2a5   : > { %v1108_v47 = vmax.f32 %v1106_v45, %v1107_v46 }
 0x2a7   : > { %1317 = vmatmul.msk.f32.vlgmr.msra.gmra.mxu2 %vm1001_vm7, %v1108_v47 }
 0x32a   : > { %v1132_v49 = vpop.f32.mrf.mxu2 }
 0x32b   : > { %v1133_v50 = vadd.f32 %v1132_v49, %v1111_v48 }
 0x32d   : > { %1136 = vst.msk [vmem:[%s697_s22] sm:$0x1] %vm1135_vm8, %v1133_v50 }
 0x32e   : > { %1674 = shalt.err (!%p1671_p8)
}
 0x32f   : > { %1349 = dma.vmem_to_hbm [thread:$0]  (%p1872_p5), %s1149_s2, 16, %s1151_s28, %s1138_s29  }
 0x330 PF: > { %s2153_s27 = sld [smem:[#allocation22_spill]] }
 0x331   : > { %s2154_s18 = sld [smem:[#allocation20_spill]] }
 0x336   : > { %p1391_p9 = scmp.ge.s32.totalorder %s2153_s27, 2 }
 0x337   : > { %s1162_s20 = sand.u32 1, %s2154_s18  }
 0x338   : > { %p1374_p10 = pnand %p1391_p9, %p1876_p6  ;;  %s1163_s22 = scalar_lea.sflag [#allocation4], %s1162_s20 }
 0x33a   : > { %p1375_p11 = pneg %p1374_p10 }
 0x33c   : > { %1708 = dma.done.wait (%p1375_p11), %s1163_s22, 16  }
 0x33d   : > { %1710 = vsyncadd (%p1375_p11), %s1163_s22, 4294967280  ;;  %s2156_s21 = sld [smem:[#allocation23_spill]]  ;;  %s2159_s0 = smov %s1717_s30 }
 0x33e   : > { %s2157_s3 = sld [smem:[#allocation21_spill]] }
 0x33f   : > { %s2158_s20 = sld [smem:[#allocation24_spill]] }
 0x343   : > { %p33_p12 = scmp.ge.s32.totalorder %s2156_s21, 4  }
 0x344   : > { %s2160_s30 = smov %s2157_s3 }
 0x345   :  { %35 = sbr.rel (!%p33_p12) target bundleno = 15 (0xf), region = 160 }
 0x34a   :  { %1168 = vsyncpa [#allocation3], 1 }
 0x34b   :  { %1170 = vsyncpa [#allocation3 + $0x1], 1 }
 0x34c   :  { %1171 = vsyncpa [#allocation6], 1 }
 0x34d   :  { %1172 = vsyncpa [#allocation9], 1 }
 0x34e   :  { %1173 = vsyncpa [#allocation12], 1 }
 0x34f   :  { %1174 = vsyncpa [#allocation4], 1 }
 0x350   :  { %1176 = vsyncpa [#allocation4 + $0x1], 1 }

</bundles_post_ra>
